<compile_context>
chip_gen: v7x
topology: tpu7x:2x2x1
jax: 0.10.0
libtpu: 0.0.40
codegen_flags: <defaults>
</compile_context>

<pallas_src>
import functools

import jax
import jax.numpy as jnp
from jax.experimental import pallas as pl
from jax.experimental.pallas import tpu as pltpu


_SQRT_HALF = 0.7071067811865476


def _gelu_erf(h, *, approx_recip=False):
    # Exact (erf-based) GELU matching F.gelu's default, built only from
    # mul/add/abs/where/exp (+ optional EUP reciprocal) so it lowers cleanly in
    # Mosaic.  erf via Abramowitz & Stegun 7.1.26 (max abs err ~1.5e-7).
    z = h * _SQRT_HALF
    za = jnp.abs(z)
    denom = 1.0 + 0.3275911 * za
    t = pl.reciprocal(denom, approx=True) if approx_recip else 1.0 / denom
    poly = ((((1.061405429 * t - 1.453152027) * t + 1.421413741) * t
             - 0.284496736) * t + 0.254829592) * t
    erf_abs = 1.0 - poly * jnp.exp(-za * za)
    erf_z = jnp.where(z >= 0.0, erf_abs, -erf_abs)
    return 0.5 * h * (1.0 + erf_z)


def _ffn_kernel_resident(x_ref, w1_ref, b1_ref, w2_ref, b2_ref, o_ref, *,
                         approx_recip):
    # Weights fully resident in VMEM; single grid axis over M tiles.
    h = jnp.dot(x_ref[...], w1_ref[...], preferred_element_type=jnp.float32)
    h = _gelu_erf(h + b1_ref[...].astype(jnp.float32), approx_recip=approx_recip)
    out = jnp.dot(h.astype(w2_ref.dtype), w2_ref[...],
                  preferred_element_type=jnp.float32)
    o_ref[...] = (out + b2_ref[...].astype(jnp.float32)).astype(o_ref.dtype)


def _ffn_kernel_tiled(x_ref, w1_ref, b1_ref, w2_ref, b2_ref, o_ref, acc_ref, *,
                      approx_recip):
    # Grid: (M tiles, ffn tiles).  Axis 1 (ffn) is the reduction axis (last,
    # "arbitrary"); f32 accumulator lives in VMEM scratch across it.
    f = pl.program_id(1)

    @pl.when(f == 0)
    def _init():
        acc_ref[...] = jnp.zeros_like(acc_ref)

    h = jnp.dot(x_ref[...], w1_ref[...], preferred_element_type=jnp.float32)
    h = _gelu_erf(h + b1_ref[...].astype(jnp.float32), approx_recip=approx_recip)
    acc_ref[...] += jnp.dot(h.astype(w2_ref.dtype), w2_ref[...],
                            preferred_element_type=jnp.float32)

    @pl.when(f == pl.num_programs(1) - 1)
    def _finalize():
        o_ref[...] = (acc_ref[...] + b2_ref[...].astype(jnp.float32)
                      ).astype(o_ref.dtype)


def _round_up(x, m):
    return ((x + m - 1) // m) * m


def _align_tile(t):
    # Prefer MXU-friendly multiples (v6e/v7x MXU is 256-wide), fall back to 128,
    # then sublane-aligned 8.
    if t >= 256:
        return (t // 256) * 256
    if t >= 128:
        return 128
    return max(8, (t // 8) * 8)


def _vmem_capacity_bytes():
    # Generation-aware VMEM (v5e/v6e: 128 MiB, v7x: 64 MiB per TensorCore).
    try:
        cap = getattr(pltpu.get_tpu_info(), "vmem_capacity_bytes", None)
        if cap:
            return int(cap)
    except Exception:
        pass
    return 64 * 1024 * 1024  # conservative (v7x) fallback


@functools.partial(jax.jit,
                   static_argnames=("tm_max", "tf_max", "use_bf16", "fast_gelu"))
def ffn_forward(x, w1, b1, w2, b2, *, tm_max=512, tf_max=512,
                use_bf16=False, fast_gelu=False):
    """Pallas implementation of FeedForwardNetwork.forward.

    x : (..., dim_hidden)
    w1: (dim_ffn, dim_hidden)   == conv1.weight.squeeze(-1)
    b1: (dim_ffn,)              == conv1.bias
    w2: (dim_hidden, dim_ffn)   == conv2.weight.squeeze(-1)
    b2: (dim_hidden,)           == conv2.bias
    returns (..., dim_hidden)
    """
    dim_ffn, dim_hidden = w1.shape
    assert w2.shape == (dim_hidden, dim_ffn)
    assert x.shape[-1] == dim_hidden
    orig_shape = x.shape
    out_dtype = x.dtype

    x2d = x.reshape(-1, dim_hidden)
    M = x2d.shape[0]

    # One-time param prep: pre-transpose so both in-kernel dots are canonical
    # MXU layout (no per-step weight-tile transposes on the XLU).
    w1t = w1.T                       # (dim_hidden, dim_ffn)
    w2t = w2.T                       # (dim_ffn, dim_hidden)

    if use_bf16:
        x2d = x2d.astype(jnp.bfloat16)
        w1t = w1t.astype(jnp.bfloat16)
        w2t = w2t.astype(jnp.bfloat16)
    in_itemsize = x2d.dtype.itemsize
    out_itemsize = jnp.dtype(out_dtype).itemsize

    # ---- Generation-aware VMEM budgeting ----
    vmem_cap = _vmem_capacity_bytes()
    vmem_limit = int(min(0.75 * vmem_cap, 100 * 1024 * 1024))
    budget = int(0.45 * vmem_cap)        # tile working-set budget (compiler headroom)

    # ---- ffn (reduction) tiling: weights-resident fast path when they fit ----
    tf_max = max(128, (tf_max // 128) * 128)
    ffn_p128 = _round_up(dim_ffn, 128)
    w_bytes_resident = 2 * dim_hidden * ffn_p128 * in_itemsize
    resident = w_bytes_resident <= budget // 2
    tf = ffn_p128 if resident else min(tf_max, ffn_p128)
    dim_ffn_p = _round_up(dim_ffn, tf)
    n_f = dim_ffn_p // tf

    # Zero-pad the ffn dim: padded W1 columns / b1 entries / W2 rows are zero, so
    # they contribute nothing to the output.
    if dim_ffn_p != dim_ffn:
        pad = dim_ffn_p - dim_ffn
        w1t = jnp.pad(w1t, ((0, 0), (0, pad)))
        w2t = jnp.pad(w2t, ((0, pad), (0, 0)))
        b1 = jnp.pad(b1, (0, pad))

    # ---- M tiling: as large as the budget allows, MXU-aligned, >=2 parallel
    #      steps when possible (v7x megacore) ----
    w_fixed = (w_bytes_resident if resident
               else 2 * (2 * dim_hidden * tf * in_itemsize))   # double-buffered tiles
    per_row = (2 * dim_hidden * in_itemsize       # x tile (double-buffered)
               + 2 * dim_hidden * out_itemsize    # out tile (double-buffered)
               + tf * 4                           # f32 intermediate h
               + (0 if resident else dim_hidden * 4))          # f32 accumulator
    tm_fit = max(8, (budget - w_fixed) // per_row)
    tm = _align_tile(min(tm_max, tm_fit))
    tm = min(tm, _round_up(M, 8))
    if _round_up(M, tm) // tm < 2 and tm > 8:
        tm = max(8, _round_up(tm // 2, 8))        # keep both TensorCores busy
    m_pad = _round_up(M, tm)
    if m_pad != M:
        x2d = jnp.pad(x2d, ((0, m_pad - M), (0, 0)))
    n_m = m_pad // tm

    b1_2d = b1.reshape(1, dim_ffn_p)
    b2_2d = b2.reshape(1, dim_hidden)

    w_bytes = 2 * dim_hidden * dim_ffn_p * in_itemsize
    cost = pl.CostEstimate(
        flops=2 * 2 * m_pad * dim_ffn_p * dim_hidden,
        transcendentals=2 * m_pad * dim_ffn_p,            # exp + recip per element
        bytes_accessed=(m_pad * dim_hidden * (in_itemsize + out_itemsize)
                        + (w_bytes if resident else n_m * w_bytes)
                        + dim_ffn_p * 4 + dim_hidden * 4),
    )

    if resident:
        kernel = functools.partial(_ffn_kernel_resident, approx_recip=fast_gelu)
        grid_spec = pltpu.PrefetchScalarGridSpec(
            num_scalar_prefetch=0,
            grid=(n_m,),
            in_specs=[
                pl.BlockSpec((tm, dim_hidden), lambda i: (i, 0)),      # x rows
                pl.BlockSpec((dim_hidden, tf), lambda i: (0, 0)),      # W1^T resident
                pl.BlockSpec((1, tf), lambda i: (0, 0)),               # b1
                pl.BlockSpec((tf, dim_hidden), lambda i: (0, 0)),      # W2^T resident
                pl.BlockSpec((1, dim_hidden), lambda i: (0, 0)),       # b2
            ],
            out_specs=pl.BlockSpec((tm, dim_hidden), lambda i: (i, 0)),
            scratch_shapes=[],
        )
        dim_sem = ("parallel",)
    else:
        kernel = functools.partial(_ffn_kernel_tiled, approx_recip=fast_gelu)
        grid_spec = pltpu.PrefetchScalarGridSpec(
            num_scalar_prefetch=0,
            grid=(n_m, n_f),
            in_specs=[
                pl.BlockSpec((tm, dim_hidden), lambda i, f: (i, 0)),   # x rows
                pl.BlockSpec((dim_hidden, tf), lambda i, f: (0, f)),   # W1^T block
                pl.BlockSpec((1, tf), lambda i, f: (0, f)),            # b1 block
                pl.BlockSpec((tf, dim_hidden), lambda i, f: (f, 0)),   # W2^T block
                pl.BlockSpec((1, dim_hidden), lambda i, f: (0, 0)),    # b2
            ],
            out_specs=pl.BlockSpec((tm, dim_hidden), lambda i, f: (i, 0)),
            scratch_shapes=[pltpu.VMEM((tm, dim_hidden), jnp.float32)],
        )
        dim_sem = ("parallel", "arbitrary")

    out2d = pl.pallas_call(
        kernel,
        out_shape=jax.ShapeDtypeStruct((m_pad, dim_hidden), out_dtype),
        grid_spec=grid_spec,
        compiler_params=pltpu.CompilerParams(
            dimension_semantics=dim_sem,
            vmem_limit_bytes=vmem_limit,
        ),
        cost_estimate=cost,
    )(x2d, w1t, b1_2d, w2t, b2_2d)

    out2d = out2d[:M]
    return out2d.reshape(*orig_shape[:-1], dim_hidden)


if __name__ == "__main__":
    # Small, lane-friendly shapes consistent with the module:
    #   batch=2, seq=16, dim_hidden=128, dim_ffn=512.
    batch, seq, dim_hidden, dim_ffn = 2, 16, 128, 512

    key = jax.random.PRNGKey(0)
    kx, k1, kb1, k2, kb2 = jax.random.split(key, 5)

    x = jax.random.normal(kx, (batch, seq, dim_hidden), dtype=jnp.float32)

    # Conv1d(kernel_size=1) params (squeezed), PyTorch-style uniform init bounds.
    bound1 = 1.0 / (dim_hidden ** 0.5)
    w1 = jax.random.uniform(k1, (dim_ffn, dim_hidden), jnp.float32, -bound1, bound1)
    b1 = jax.random.uniform(kb1, (dim_ffn,), jnp.float32, -bound1, bound1)
    bound2 = 1.0 / (dim_ffn ** 0.5)
    w2 = jax.random.uniform(k2, (dim_hidden, dim_ffn), jnp.float32, -bound2, bound2)
    b2 = jax.random.uniform(kb2, (dim_hidden,), jnp.float32, -bound2, bound2)

    out = ffn_forward(x, w1, b1, w2, b2)
    out = jax.block_until_ready(out)

    # Plain-JAX reference of the PyTorch forward (exact erf-based GELU).
    h = jnp.einsum("bsd,fd->bsf", x, w1, precision=jax.lax.Precision.HIGHEST) + b1
    h = 0.5 * h * (1.0 + jax.scipy.special.erf(h * 0.7071067811865476))
    ref = jnp.einsum("bsf,df->bsd", h, w2, precision=jax.lax.Precision.HIGHEST) + b2

    assert out.shape == (batch, seq, dim_hidden)
    max_err = float(jnp.max(jnp.abs(out - ref)))
    assert jnp.allclose(out, ref, atol=2e-3, rtol=2e-3), f"max_err={max_err}"

    print("KERNEL_OK")
</pallas_src>

<mosaic_0001>
module attributes {stable_mosaic.version = 11 : i64} {
  func.func @_ffn_kernel_resident(%arg0: i32, %arg1: memref<16x128xf32, #tpu.memory_space<vmem>>, %arg2: memref<128x512xf32, #tpu.memory_space<vmem>>, %arg3: memref<1x512xf32, #tpu.memory_space<vmem>>, %arg4: memref<512x128xf32, #tpu.memory_space<vmem>>, %arg5: memref<1x128xf32, #tpu.memory_space<vmem>>, %arg6: memref<16x128xf32, #tpu.memory_space<vmem>>) attributes {dimension_semantics = [#tpu.dimension_semantics<parallel>], iteration_bounds = array<i64: 2>, scalar_prefetch = 0 : i64, scratch_operands = 0 : i64, tpu.core_type = #tpu.core_type<tc>, window_params = [{transform_indices = @transform_0, window_bounds = array<i64: 16, 128>}, {pipeline_mode = #tpu.pipeline_mode<synchronous>, transform_indices = @transform_1, window_bounds = array<i64: 128, 512>}, {pipeline_mode = #tpu.pipeline_mode<synchronous>, transform_indices = @transform_2, window_bounds = array<i64: 1, 512>}, {pipeline_mode = #tpu.pipeline_mode<synchronous>, transform_indices = @transform_3, window_bounds = array<i64: 512, 128>}, {pipeline_mode = #tpu.pipeline_mode<synchronous>, transform_indices = @transform_4, window_bounds = array<i64: 1, 128>}, {transform_indices = @transform_5, window_bounds = array<i64: 16, 128>}]} {
    %c0 = arith.constant 0 : index
    %c0_0 = arith.constant 0 : index
    %0 = vector.load %arg1[%c0, %c0_0] : memref<16x128xf32, #tpu.memory_space<vmem>>, vector<16x128xf32>
    %c0_1 = arith.constant 0 : index
    %c0_2 = arith.constant 0 : index
    %1 = vector.load %arg2[%c0_1, %c0_2] : memref<128x512xf32, #tpu.memory_space<vmem>>, vector<128x512xf32>
    %cst = arith.constant dense<0.000000e+00> : vector<16x512xf32>
    %2 = tpu.matmul %0, %1, %cst {dimension_numbers = #tpu.dot_dimension_numbers<[1], [0], [0], [1], [0, 0, 1, 1], [], []>} : vector<16x128xf32>, vector<128x512xf32>, vector<16x512xf32> -> vector<16x512xf32>
    %c0_3 = arith.constant 0 : index
    %c0_4 = arith.constant 0 : index
    %3 = vector.load %arg3[%c0_3, %c0_4] : memref<1x512xf32, #tpu.memory_space<vmem>>, vector<1x512xf32>
    %4 = vector.broadcast %3 : vector<1x512xf32> to vector<16x512xf32>
    %5 = arith.addf %2, %4 : vector<16x512xf32>
    %cst_5 = arith.constant 0.707106769 : f32
    %6 = vector.broadcast %cst_5 : f32 to vector<16x512xf32>
    %7 = arith.mulf %5, %6 : vector<16x512xf32>
    %8 = math.absf %7 : vector<16x512xf32>
    %cst_6 = arith.constant 0.327591091 : f32
    %9 = vector.broadcast %cst_6 : f32 to vector<16x512xf32>
    %10 = arith.mulf %9, %8 : vector<16x512xf32>
    %cst_7 = arith.constant 1.000000e+00 : f32
    %11 = vector.broadcast %cst_7 : f32 to vector<16x512xf32>
    %12 = arith.addf %11, %10 : vector<16x512xf32>
    %cst_8 = arith.constant 1.000000e+00 : f32
    %13 = vector.broadcast %cst_8 : f32 to vector<16x512xf32>
    %14 = arith.divf %13, %12 : vector<16x512xf32>
    %cst_9 = arith.constant 1.06140542 : f32
    %15 = vector.broadcast %cst_9 : f32 to vector<16x512xf32>
    %16 = arith.mulf %15, %14 : vector<16x512xf32>
    %cst_10 = arith.constant 1.45315206 : f32
    %17 = vector.broadcast %cst_10 : f32 to vector<16x512xf32>
    %18 = arith.subf %16, %17 : vector<16x512xf32>
    %19 = arith.mulf %18, %14 : vector<16x512xf32>
    %cst_11 = arith.constant 1.42141378 : f32
    %20 = vector.broadcast %cst_11 : f32 to vector<16x512xf32>
    %21 = arith.addf %19, %20 : vector<16x512xf32>
    %22 = arith.mulf %21, %14 : vector<16x512xf32>
    %cst_12 = arith.constant 0.284496725 : f32
    %23 = vector.broadcast %cst_12 : f32 to vector<16x512xf32>
    %24 = arith.subf %22, %23 : vector<16x512xf32>
    %25 = arith.mulf %24, %14 : vector<16x512xf32>
    %cst_13 = arith.constant 0.254829586 : f32
    %26 = vector.broadcast %cst_13 : f32 to vector<16x512xf32>
    %27 = arith.addf %25, %26 : vector<16x512xf32>
    %28 = arith.mulf %27, %14 : vector<16x512xf32>
    %cst_14 = arith.constant 0.000000e+00 : f32
    %29 = vector.broadcast %cst_14 : f32 to vector<16x512xf32>
    %30 = arith.subf %29, %8 : vector<16x512xf32>
    %31 = arith.mulf %30, %8 : vector<16x512xf32>
    %32 = math.exp %31 : vector<16x512xf32>
    %33 = arith.mulf %28, %32 : vector<16x512xf32>
    %cst_15 = arith.constant 1.000000e+00 : f32
    %34 = vector.broadcast %cst_15 : f32 to vector<16x512xf32>
    %35 = arith.subf %34, %33 : vector<16x512xf32>
    %cst_16 = arith.constant 0.000000e+00 : f32
    %36 = vector.broadcast %cst_16 : f32 to vector<16x512xf32>
    %37 = arith.cmpf oge, %7, %36 : vector<16x512xf32>
    %cst_17 = arith.constant 0.000000e+00 : f32
    %38 = vector.broadcast %cst_17 : f32 to vector<16x512xf32>
    %39 = arith.subf %38, %35 : vector<16x512xf32>
    %40 = arith.select %37, %35, %39 : vector<16x512xi1>, vector<16x512xf32>
    %cst_18 = arith.constant 5.000000e-01 : f32
    %41 = vector.broadcast %cst_18 : f32 to vector<16x512xf32>
    %42 = arith.mulf %41, %5 : vector<16x512xf32>
    %cst_19 = arith.constant 1.000000e+00 : f32
    %43 = vector.broadcast %cst_19 : f32 to vector<16x512xf32>
    %44 = arith.addf %43, %40 : vector<16x512xf32>
    %45 = arith.mulf %42, %44 : vector<16x512xf32>
    %c0_20 = arith.constant 0 : index
    %c0_21 = arith.constant 0 : index
    %46 = vector.load %arg4[%c0_20, %c0_21] : memref<512x128xf32, #tpu.memory_space<vmem>>, vector<512x128xf32>
    %cst_22 = arith.constant dense<0.000000e+00> : vector<16x128xf32>
    %47 = tpu.matmul %45, %46, %cst_22 {dimension_numbers = #tpu.dot_dimension_numbers<[1], [0], [0], [1], [0, 0, 1, 1], [], []>} : vector<16x512xf32>, vector<512x128xf32>, vector<16x128xf32> -> vector<16x128xf32>
    %c0_23 = arith.constant 0 : index
    %c0_24 = arith.constant 0 : index
    %48 = vector.load %arg5[%c0_23, %c0_24] : memref<1x128xf32, #tpu.memory_space<vmem>>, vector<1x128xf32>
    %49 = vector.broadcast %48 : vector<1x128xf32> to vector<16x128xf32>
    %50 = arith.addf %47, %49 : vector<16x128xf32>
    %c0_25 = arith.constant 0 : index
    %c0_26 = arith.constant 0 : index
    %51 = vector.load %arg6[%c0_25, %c0_26] : memref<16x128xf32, #tpu.memory_space<vmem>>, vector<16x128xf32>
    tpu.vector_store %arg6[%c0_25, %c0_26], %50 {strides = array<i32>} : memref<16x128xf32, #tpu.memory_space<vmem>>, vector<16x128xf32>,
    return
  }
  func.func @transform_0(%arg0: i32) -> (i32, i32) {
    %c0_i32 = arith.constant 0 : i32
    %c0_i32_0 = arith.constant 0 : i32
    return %arg0, %c0_i32 : i32, i32
  }
  func.func @transform_1(%arg0: i32) -> (i32, i32) {
    %c0_i32 = arith.constant 0 : i32
    %c0_i32_0 = arith.constant 0 : i32
    %c0_i32_1 = arith.constant 0 : i32
    return %c0_i32, %c0_i32_0 : i32, i32
  }
  func.func @transform_2(%arg0: i32) -> (i32, i32) {
    %c0_i32 = arith.constant 0 : i32
    %c0_i32_0 = arith.constant 0 : i32
    %c0_i32_1 = arith.constant 0 : i32
    return %c0_i32, %c0_i32_0 : i32, i32
  }
  func.func @transform_3(%arg0: i32) -> (i32, i32) {
    %c0_i32 = arith.constant 0 : i32
    %c0_i32_0 = arith.constant 0 : i32
    %c0_i32_1 = arith.constant 0 : i32
    return %c0_i32, %c0_i32_0 : i32, i32
  }
  func.func @transform_4(%arg0: i32) -> (i32, i32) {
    %c0_i32 = arith.constant 0 : i32
    %c0_i32_0 = arith.constant 0 : i32
    %c0_i32_1 = arith.constant 0 : i32
    return %c0_i32, %c0_i32_0 : i32, i32
  }
  func.func @transform_5(%arg0: i32) -> (i32, i32) {
    %c0_i32 = arith.constant 0 : i32
    %c0_i32_0 = arith.constant 0 : i32
    return %arg0, %c0_i32 : i32, i32
  }
}

</mosaic_0001>

<bundles_post_ra>
// kernel: ffn_forward.1
= control target key start
LH: loop header
LB: loop body
LE: loop exit
PB: predicated region body
PF: predicated region fallthrough
CT: control target
= control target key end

     0   :  { %10 = vsyncpa [#allocation3], 0  ;;  %s2019_s0 = inlined_call_operand.vmem [shape: f32[32,128], index: 0, kind: input, shape index: {}]   ;;  %s2020_s1 = inlined_call_operand.vmem [shape: f32[128,512], index: 1, kind: input, shape index: {}]   ;;  %s2021_s2 = inlined_call_operand.vmem [shape: f32[1,512], index: 2, kind: input, shape index: {}]   ;;  %s2022_s3 = inlined_call_operand.vmem [shape: f32[512,128], index: 3, kind: input, shape index: {}]   ;;  %s2023_s4 = inlined_call_operand.vmem [shape: f32[1,128], index: 4, kind: input, shape index: {}]   ;;  %s2024_s5 = inlined_call_operand.hbm [shape: f32[32,128], index: 5, kind: output, shape index: {}]  }
   0x1   :  { %12 = vsyncpa [#allocation3 + $0x1], 0  ;;  %s1389_s18 = smov 0   ;;  %s1391_s19 = smov 0  }
   0x2   :  { %s1393_s20 = smov 0   ;;  %s1395_s21 = smov 0  }
   0x3 LB: > { %s1410_s22 = sadd.s32 4294967295, %s1353_s21   ;;  %s983_s23 = sadd.s32 4294967294, %s1353_s21   ;;  %s1353_s21 = sphi %s1395_s21, %s2031_s21   ;;  %s1349_s20 = sphi %s1393_s20, %s2030_s20   ;;  %s1345_s19 = sphi %s1391_s19, %s2029_s19   ;;  %s1341_s18 = sphi %s1389_s18, %s2028_s18  }
   0x4   : > { %s1414_s24 = sadd.s32 1, %s1353_s21   ;;  %s135_s25 = sadd.s32 1, %s1349_s20 }
   0x5   : > { %s132_s26 = ssub.s32 %s1353_s21, %s1414_s24  ;;  %p145_p0 = scmp.ne.s32.totalorder %s1349_s20, %s1345_s19 }
   0x6   : > { %p133_p1 = scmp.eq.s32.totalorder %s132_s26, 0  ;;  %p146_p2 = scmp.eq.s32.totalorder %s1410_s22, 1 }
   0x7   : > { %p151_p3 = scmp.ne.s32.totalorder %s1345_s19, %s1341_s18  ;;  %p152_p4 = scmp.eq.s32.totalorder %s983_s23, 1 }
   0x8   : > { %s1425_s27 = scalar_select %p133_p1, %s1349_s20, %s135_s25  }
   0x9   : > { %p1427_p5 = por %p146_p2, %p145_p0  ;;  %p1431_p6 = por %p152_p4, %p151_p3 }
   0xa   : > { %p986_p7 = scmp.ge.s32.totalorder %s1353_s21, 1  ;;  %p191_p8 = scmp.lt.s32.totalorder %s1353_s21, 3 }
   0xc   : > { %p192_p9 = pnand %p986_p7, %p191_p8 }
   0xd   : > { %v229_v0 = vld [vmem:[%s2020_s1 + $0x8] sm:$0xff] (!%p192_p9)  ;;  %v231_v2 = vld [vmem:[%s2020_s1 + $0x18] sm:$0xff] (!%p192_p9)  ;;  %v228_v5 = vld [vmem:[%s2020_s1] sm:$0xff] (!%p192_p9)  ;;  %v1355_v7 = vmov (!%p192_p9), 0.0   ;;  %s988_s13 = sshll.u32 (!%p192_p9), %s1410_s22, 1  ;;  %s216_s16 = sand.u32 (!%p192_p9), 1, %s1345_s19  }
   0xe   : > { %195 = sbr.rel (%p192_p9) target bundleno = 557 (0x22d), region = 40  ;;  %v233_v1 = vld [vmem:[%s2020_s1 + $0x28] sm:$0xff] (!%p192_p9)  ;;  %v235_v4 = vld [vmem:[%s2020_s1 + $0x38] sm:$0xff] (!%p192_p9)  ;;  %v232_v6 = vld [vmem:[%s2020_s1 + $0x20] sm:$0xff] (!%p192_p9)  ;;  %378 = vmatprep.mubr.f32.mxu0 (!%p192_p9), %v1355_v7  ;;  %455 = vmatprep.mubr.f32.mxu1 (!%p192_p9), %v1355_v7  ;;  %p1592_p10 = scmp.lt.s32.totalorder (!%p192_p9), %s988_s13, 3 }
   0xf   : > { %v1089_v3 = vpack.c.bf16 (!%p192_p9), %v233_v1, %v229_v0  ;;  %v1121_v8 = vpack.c.bf16 (!%p192_p9), %v235_v4, %v231_v2  ;;  %v1091_v9 = vpack.c.bf16 (!%p192_p9), %v232_v6, %v228_v5  ;;  %v230_v10 = vld [vmem:[%s2020_s1 + $0x10] sm:$0xff] (!%p192_p9)  ;;  %v237_v12 = vld [vmem:[%s2020_s1 + $0x48] sm:$0xff] (!%p192_p9)  ;;  %v239_v15 = vld [vmem:[%s2020_s1 + $0x58] sm:$0xff] (!%p192_p9)  ;;  %s987_s25 = sshll.u32 (!%p192_p9), %s216_s16, 4  ;;  %s1012_s30 = sshll.u32 (!%p192_p9), %s1410_s22, 8 }
  0x10   : > { %v234_v11 = vld [vmem:[%s2020_s1 + $0x30] sm:$0xff] (!%p192_p9)  ;;  %v241_v14 = vld [vmem:[%s2020_s1 + $0x68] sm:$0xff] (!%p192_p9)  ;;  %v243_v16 = vld [vmem:[%s2020_s1 + $0x78] sm:$0xff] (!%p192_p9)  ;;  %s218_s10 = scalar_lea.vmem (!%p192_p9), [#allocation2], %s987_s25  ;;  %s1976_s8 = scalar_lea.hbm (!%p192_p9), %s2024_s5, %s1012_s30 }
  0x11   : > { %1090 = vmatprep.subr.bf16.mxu0 (!%p192_p9), %v1089_v3  ;;  %v1123_v13 = vpack.c.bf16 (!%p192_p9), %v234_v11, %v230_v10  ;;  %1122 = vmatprep.subr.bf16.mxu1 (!%p192_p9), %v1121_v8  ;;  %v1093_v17 = vpack.c.bf16 (!%p192_p9), %v241_v14, %v237_v12  ;;  %v1125_v18 = vpack.c.bf16 (!%p192_p9), %v243_v16, %v239_v15  ;;  %v236_v19 = vld [vmem:[%s2020_s1 + $0x40] sm:$0xff] (!%p192_p9)  ;;  %v238_v21 = vld [vmem:[%s2020_s1 + $0x50] sm:$0xff] (!%p192_p9)  ;;  %v245_v24 = vld [vmem:[%s2020_s1 + $0x88] sm:$0xff] (!%p192_p9)  ;;  %s921_s26 = sshll.u32 (!%p192_p9), %s218_s10, 4  ;;  %s1356_s22 = smov (!%p192_p9), [#allocation2]   ;;  %s1971_s26 = int_to_ptr.vmem [resolvable:$true] %s921_s26 }
  0x12   : > { %1092 = vmatpush1.bf16.msra.mxu0 (!%p192_p9), %v1091_v9  ;;  %v240_v20 = vld [vmem:[%s2020_s1 + $0x60] sm:$0xff] (!%p192_p9)  ;;  %v242_v23 = vld [vmem:[%s2020_s1 + $0x70] sm:$0xff] (!%p192_p9)  ;;  %v249_v25 = vld [vmem:[%s2020_s1 + $0xa8] sm:$0xff] (!%p192_p9)  ;;  %s1291_s11 = scalar_lea.vmem (!%p192_p9), %s1971_s26, 256  ;;  %s1295_s12 = sshll.u32 (!%p192_p9), %s1356_s22, 4  ;;  %s1296_s12 = int_to_ptr.vmem [resolvable:$false] %s1295_s12 }
  0x13   : > { %1124 = vmatpush1.bf16.msra.mxu1 (!%p192_p9), %v1123_v13  ;;  %v1095_v22 = vpack.c.bf16 (!%p192_p9), %v240_v20, %v236_v19  ;;  %1094 = vmatprep.subr.bf16.mxu0 (!%p192_p9), %v1093_v17  ;;  %v1127_v26 = vpack.c.bf16 (!%p192_p9), %v242_v23, %v238_v21  ;;  %v1097_v27 = vpack.c.bf16 (!%p192_p9), %v249_v25, %v245_v24  ;;  %v247_v28 = vld [vmem:[%s2020_s1 + $0x98] sm:$0xff] (!%p192_p9)  ;;  %v244_v30 = vld [vmem:[%s2020_s1 + $0x80] sm:$0xff] (!%p192_p9)  ;;  %v246_v33 = vld [vmem:[%s2020_s1 + $0x90] sm:$0xff] (!%p192_p9)  ;;  %p1292_p11 = scmp.ne.s32.totalorder (!%p192_p9), %s1971_s26, %s1291_s11  ;;  %p1298_p0 = scmp.lt.s32.totalorder (!%p192_p9), %s1971_s26, %s1296_s12 }
  0x14   : > { %1126 = vmatprep.subr.bf16.mxu1 (!%p192_p9), %v1125_v18  ;;  %v251_v29 = vld [vmem:[%s2020_s1 + $0xb8] sm:$0xff] (!%p192_p9)  ;;  %v248_v32 = vld [vmem:[%s2020_s1 + $0xa0] sm:$0xff] (!%p192_p9)  ;;  %v250_v34 = vld [vmem:[%s2020_s1 + $0xb0] sm:$0xff] (!%p192_p9) }
  0x15   : > { %v1129_v31 = vpack.c.bf16 %v251_v29, %v247_v28  ;;  %v1099_v35 = vpack.c.bf16 %v248_v32, %v244_v30  ;;  %v253_v36 = vld [vmem:[%s2020_s1 + $0xc8] sm:$0xff]  ;;  %v255_v38 = vld [vmem:[%s2020_s1 + $0xd8] sm:$0xff]  ;;  %v1131_v39 = vpack.c.bf16 %v250_v34, %v246_v33  ;;  %v252_v42 = vld [vmem:[%s2020_s1 + $0xc0] sm:$0xff]  ;;  %s2033_s13 = smov (!%p1592_p10, %s988_s13), 3  ;;  %p1293_p12 = pnand %p1292_p11, %p1427_p5 }
  0x16   : > { %1096 = vmatpush1.bf16.msra.mxu0 %v1095_v22  ;;  %v257_v37 = vld [vmem:[%s2020_s1 + $0xe8] sm:$0xff]  ;;  %v259_v41 = vld [vmem:[%s2020_s1 + $0xf8] sm:$0xff]  ;;  %v256_v43 = vld [vmem:[%s2020_s1 + $0xe0] sm:$0xff]  ;;  %s989_s9 = sshll.u32 %s2033_s13, 3 }
  0x17   : > { %1128 = vmatpush1.bf16.msra.mxu1 %v1127_v26  ;;  %1098 = vmatprep.subr.bf16.mxu0 %v1097_v27  ;;  %v1101_v40 = vpack.c.bf16 %v257_v37, %v253_v36  ;;  %v1133_v44 = vpack.c.bf16 %v259_v41, %v255_v38  ;;  %v254_v45 = vld [vmem:[%s2020_s1 + $0xd0] sm:$0xff]  ;;  %v261_v47 = vld [vmem:[%s2020_s1 + $0x108] sm:$0xff]  ;;  %v263_v49 = vld [vmem:[%s2020_s1 + $0x118] sm:$0xff]  ;;  %v1103_v51 = vpack.c.bf16 %v256_v43, %v252_v42  ;;  %s223_s14 = scalar_lea.vmem %s2019_s0, %s989_s9  ;;  %s1978_s9 = scalar_lea.sflag [#allocation3], %s216_s16 }
  0x18   : > { %1130 = vmatprep.subr.bf16.mxu1 %v1129_v31  ;;  %v258_v46 = vld [vmem:[%s2020_s1 + $0xf0] sm:$0xff]  ;;  %v265_v48 = vld [vmem:[%s2020_s1 + $0x128] sm:$0xff]  ;;  %v267_v50 = vld [vmem:[%s2020_s1 + $0x138] sm:$0xff]  ;;  %p1294_p13 = pneg %p1293_p12 }
  0x19   : > { %v1135_v52 = vpack.c.bf16 %v258_v46, %v254_v45  ;;  %v1105_v53 = vpack.c.bf16 %v265_v48, %v261_v47  ;;  %v260_v54 = vld [vmem:[%s2020_s1 + $0x100] sm:$0xff]  ;;  %v262_v56 = vld [vmem:[%s2020_s1 + $0x110] sm:$0xff]  ;;  %v1137_v57 = vpack.c.bf16 %v267_v50, %v263_v49  ;;  %v269_v59 = vld [vmem:[%s2020_s1 + $0x148] sm:$0xff] }
  0x1a   : > { %1100 = vmatpush1.bf16.msra.mxu0 %v1099_v35  ;;  %v264_v55 = vld [vmem:[%s2020_s1 + $0x120] sm:$0xff]  ;;  %v266_v58 = vld [vmem:[%s2020_s1 + $0x130] sm:$0xff]  ;;  %v273_v60 = vld [vmem:[%s2020_s1 + $0x168] sm:$0xff] }
  0x1b   : > { %1132 = vmatpush1.bf16.msra.mxu1 %v1131_v39  ;;  %1102 = vmatprep.subr.bf16.mxu0 %v1101_v40  ;;  %v271_v61 = vld [vmem:[%s2020_s1 + $0x158] sm:$0xff]  ;;  %v1107_v63 = vpack.c.bf16 %v264_v55, %v260_v54  ;;  %v1139_v0 = vpack.c.bf16 %v266_v58, %v262_v56  ;;  %v1109_v1 = vpack.c.bf16 %v273_v60, %v269_v59  ;;  %v268_v2 = vld [vmem:[%s2020_s1 + $0x140] sm:$0xff]  ;;  %v270_v4 = vld [vmem:[%s2020_s1 + $0x150] sm:$0xff] }
  0x1c   : > { %1134 = vmatprep.subr.bf16.mxu1 %v1133_v44  ;;  %v275_v62 = vld [vmem:[%s2020_s1 + $0x178] sm:$0xff]  ;;  %v272_v3 = vld [vmem:[%s2020_s1 + $0x160] sm:$0xff]  ;;  %v274_v6 = vld [vmem:[%s2020_s1 + $0x170] sm:$0xff] }
  0x1d   : > { %v1141_v5 = vpack.c.bf16 %v275_v62, %v271_v61  ;;  %v277_v8 = vld [vmem:[%s2020_s1 + $0x188] sm:$0xff]  ;;  %v279_v10 = vld [vmem:[%s2020_s1 + $0x198] sm:$0xff]  ;;  %v1111_v12 = vpack.c.bf16 %v272_v3, %v268_v2  ;;  %v1143_v13 = vpack.c.bf16 %v274_v6, %v270_v4  ;;  %v276_v15 = vld [vmem:[%s2020_s1 + $0x180] sm:$0xff] }
  0x1e   : > { %1104 = vmatpush1.bf16.msra.mxu0 %v1103_v51  ;;  %v281_v9 = vld [vmem:[%s2020_s1 + $0x1a8] sm:$0xff]  ;;  %v283_v11 = vld [vmem:[%s2020_s1 + $0x1b8] sm:$0xff]  ;;  %v280_v16 = vld [vmem:[%s2020_s1 + $0x1a0] sm:$0xff] }
  0x1f   : > { %1136 = vmatpush1.bf16.msra.mxu1 %v1135_v52  ;;  %1106 = vmatprep.subr.bf16.mxu0 %v1105_v53  ;;  %v1113_v14 = vpack.c.bf16 %v281_v9, %v277_v8  ;;  %v278_v17 = vld [vmem:[%s2020_s1 + $0x190] sm:$0xff]  ;;  %v1145_v18 = vpack.c.bf16 %v283_v11, %v279_v10  ;;  %v285_v20 = vld [vmem:[%s2020_s1 + $0x1c8] sm:$0xff]  ;;  %v287_v22 = vld [vmem:[%s2020_s1 + $0x1d8] sm:$0xff]  ;;  %v1115_v24 = vpack.c.bf16 %v280_v16, %v276_v15 }
  0x20   : > { %1138 = vmatprep.subr.bf16.mxu1 %v1137_v57  ;;  %v282_v19 = vld [vmem:[%s2020_s1 + $0x1b0] sm:$0xff]  ;;  %v289_v21 = vld [vmem:[%s2020_s1 + $0x1e8] sm:$0xff]  ;;  %v291_v23 = vld [vmem:[%s2020_s1 + $0x1f8] sm:$0xff] }
  0x21   : > { %v1147_v25 = vpack.c.bf16 %v282_v19, %v278_v17  ;;  %v1117_v26 = vpack.c.bf16 %v289_v21, %v285_v20  ;;  %v284_v27 = vld [vmem:[%s2020_s1 + $0x1c0] sm:$0xff]  ;;  %v1149_v29 = vpack.c.bf16 %v291_v23, %v287_v22  ;;  %v286_v30 = vld [vmem:[%s2020_s1 + $0x1d0] sm:$0xff]  ;;  %v227_v35 = vld [vmem:[%s223_s14 + $0x8] sm:$0xff] }
  0x22   : > { %1108 = vmatpush1.bf16.msra.mxu0 %v1107_v63  ;;  %v288_v28 = vld [vmem:[%s2020_s1 + $0x1e0] sm:$0xff]  ;;  %v290_v31 = vld [vmem:[%s2020_s1 + $0x1f0] sm:$0xff]  ;;  %v701_v37 = vld [vmem:[%s2022_s3 + $0x88] sm:$0xff] }
  0x23   : > { %1140 = vmatpush1.bf16.msra.mxu1 %v1139_v0  ;;  %1110 = vmatprep.subr.bf16.mxu0 %v1109_v1  ;;  %v1119_v32 = vpack.c.bf16 %v288_v28, %v284_v27  ;;  %v1151_v33 = vpack.c.bf16 %v290_v31, %v286_v30  ;;  %v226_v34 = vld [vmem:[%s223_s14] sm:$0xff]  ;;  %v733_v40 = vld [vmem:[%s2022_s3 + $0x188] sm:$0xff]  ;;  %v702_v47 = vld [vmem:[%s2022_s3 + $0x90] sm:$0xff]  ;;  %s1297_s14 = scalar_lea.vmem %s1296_s12, 512 }
  0x24   : > { %1142 = vmatprep.subr.bf16.mxu1 %v1141_v5  ;;  %v700_v36 = vld [vmem:[%s2022_s3 + $0x80] sm:$0xff]  ;;  %v685_v41 = vld [vmem:[%s2022_s3 + $0x8] sm:$0xff]  ;;  %v703_v48 = vld [vmem:[%s2022_s3 + $0x98] sm:$0xff]  ;;  %p1299_p1 = scmp.lt.s32.totalorder %s1297_s14, %s1291_s11 }
  0x25   : > { %v732_v38 = vld [vmem:[%s2022_s3 + $0x180] sm:$0xff]  ;;  %v1153_v39 = vpack.c.bf16 %v701_v37, %v700_v36  ;;  %v717_v45 = vld [vmem:[%s2022_s3 + $0x108] sm:$0xff]  ;;  %v734_v49 = vld [vmem:[%s2022_s3 + $0x190] sm:$0xff]  ;;  %v1157_v50 = vpack.c.bf16 %v703_v48, %v702_v47 }
  0x26   : > { %1112 = vmatpush1.bf16.msra.mxu0 %v1111_v12  ;;  %v1185_v42 = vpack.c.bf16 %v733_v40, %v732_v38  ;;  %v716_v44 = vld [vmem:[%s2022_s3 + $0x100] sm:$0xff]  ;;  %v735_v51 = vld [vmem:[%s2022_s3 + $0x198] sm:$0xff]  ;;  %v686_v52 = vld [vmem:[%s2022_s3 + $0x10] sm:$0xff]  ;;  %p1300_p2 = por %p1299_p1, %p1298_p0 }
  0x27   : > { %1144 = vmatpush1.bf16.msra.mxu1 %v1143_v13  ;;  %1114 = vmatprep.subr.bf16.mxu0 %v1113_v14  ;;  %v1187_v46 = vpack.c.bf16 %v717_v45, %v716_v44  ;;  %v687_v53 = vld [vmem:[%s2022_s3 + $0x18] sm:$0xff]  ;;  %v1189_v54 = vpack.c.bf16 %v735_v51, %v734_v49  ;;  %v718_v56 = vld [vmem:[%s2022_s3 + $0x110] sm:$0xff]  ;;  %v704_v59 = vld [vmem:[%s2022_s3 + $0xa0] sm:$0xff] }
  0x28   : > { %1146 = vmatprep.subr.bf16.mxu1 %v1145_v18  ;;  %v1159_v55 = vpack.c.bf16 %v687_v53, %v686_v52  ;;  %v719_v57 = vld [vmem:[%s2022_s3 + $0x118] sm:$0xff]  ;;  %v705_v60 = vld [vmem:[%s2022_s3 + $0xa8] sm:$0xff]  ;;  %v736_v61 = vld [vmem:[%s2022_s3 + $0x1a0] sm:$0xff]  ;;  %p1301_p3 = pnand %p1300_p2, %p1294_p13 }
  0x29   : > { %v1191_v58 = vpack.c.bf16 %v719_v57, %v718_v56  ;;  %v1161_v62 = vpack.c.bf16 %v705_v60, %v704_v59  ;;  %v737_v63 = vld [vmem:[%s2022_s3 + $0x1a8] sm:$0xff]  ;;  %v688_v0 = vld [vmem:[%s2022_s3 + $0x20] sm:$0xff]  ;;  %v706_v8 = vld [vmem:[%s2022_s3 + $0xb0] sm:$0xff] }
  0x2a   : > { %1116 = vmatpush1.bf16.msra.mxu0 %v1115_v24  ;;  %v689_v1 = vld [vmem:[%s2022_s3 + $0x28] sm:$0xff]  ;;  %v1193_v2 = vpack.c.bf16 %v737_v63, %v736_v61  ;;  %v720_v4 = vld [vmem:[%s2022_s3 + $0x120] sm:$0xff]  ;;  %v707_v9 = vld [vmem:[%s2022_s3 + $0xb8] sm:$0xff] }
  0x2b   : > { %1148 = vmatpush1.bf16.msra.mxu1 %v1147_v25  ;;  %1118 = vmatprep.subr.bf16.mxu0 %v1117_v26  ;;  %v1163_v3 = vpack.c.bf16 %v689_v1, %v688_v0  ;;  %v721_v5 = vld [vmem:[%s2022_s3 + $0x128] sm:$0xff]  ;;  %v738_v10 = vld [vmem:[%s2022_s3 + $0x1b0] sm:$0xff]  ;;  %v1165_v11 = vpack.c.bf16 %v707_v9, %v706_v8  ;;  %v739_v12 = vld [vmem:[%s2022_s3 + $0x1b8] sm:$0xff] }
  0x2c   : > { %1150 = vmatprep.subr.bf16.mxu1 %v1149_v29  ;;  %v1195_v6 = vpack.c.bf16 %v721_v5, %v720_v4  ;;  %v690_v13 = vld [vmem:[%s2022_s3 + $0x30] sm:$0xff]  ;;  %v691_v14 = vld [vmem:[%s2022_s3 + $0x38] sm:$0xff]  ;;  %v1197_v15 = vpack.c.bf16 %v739_v12, %v738_v10  ;;  %v708_v20 = vld [vmem:[%s2022_s3 + $0xc0] sm:$0xff] }
  0x2d   : > { %v1167_v16 = vpack.c.bf16 %v691_v14, %v690_v13  ;;  %v722_v17 = vld [vmem:[%s2022_s3 + $0x130] sm:$0xff]  ;;  %v723_v18 = vld [vmem:[%s2022_s3 + $0x138] sm:$0xff]  ;;  %v709_v21 = vld [vmem:[%s2022_s3 + $0xc8] sm:$0xff] }
  0x2e   : > { %1120 = vmatpush1.bf16.msra.mxu0 %v1119_v32  ;;  %v1199_v19 = vpack.c.bf16 %v723_v18, %v722_v17  ;;  %v740_v22 = vld [vmem:[%s2022_s3 + $0x1c0] sm:$0xff]  ;;  %v1169_v23 = vpack.c.bf16 %v709_v21, %v708_v20  ;;  %v741_v24 = vld [vmem:[%s2022_s3 + $0x1c8] sm:$0xff]  ;;  %v710_v31 = vld [vmem:[%s2022_s3 + $0xd0] sm:$0xff] }
  0x2f   : > { %1152 = vmatpush1.bf16.msra.mxu1 %v1151_v33  ;;  %1154 = vmatprep.subr.bf16.mxu0 %v1153_v39  ;;  %v692_v25 = vld [vmem:[%s2022_s3 + $0x40] sm:$0xff]  ;;  %v693_v26 = vld [vmem:[%s2022_s3 + $0x48] sm:$0xff]  ;;  %v1201_v27 = vpack.c.bf16 %v741_v24, %v740_v22  ;;  %v711_v33 = vld [vmem:[%s2022_s3 + $0xd8] sm:$0xff] }
  0x30   : > { %1186 = vmatprep.subr.bf16.mxu1 %v1185_v42  ;;  %v1171_v28 = vpack.c.bf16 %v693_v26, %v692_v25  ;;  %v724_v29 = vld [vmem:[%s2022_s3 + $0x140] sm:$0xff]  ;;  %v725_v30 = vld [vmem:[%s2022_s3 + $0x148] sm:$0xff]  ;;  %v1173_v36 = vpack.c.bf16 %v711_v33, %v710_v31  ;;  %v694_v38 = vld [vmem:[%s2022_s3 + $0x50] sm:$0xff] }
  0x31   : > { %379 = vmatmul.mubr.f32.vlgmr.msra.gmra.mrb[0].mxu0 %v226_v34  ;;  %v1203_v32 = vpack.c.bf16 %v725_v30, %v724_v29  ;;  %v695_v39 = vld [vmem:[%s2022_s3 + $0x58] sm:$0xff]  ;;  %v726_v40 = vld [vmem:[%s2022_s3 + $0x150] sm:$0xff]  ;;  %v712_v42 = vld [vmem:[%s2022_s3 + $0xe0] sm:$0xff] }
  0x32   : > { %456 = vmatmul.mubr.f32.vlgmr.msra.gmra.mrb[0].mxu1 %v226_v34  ;;  %384 = vmatprep.mubr.f32.mxu0 %v1355_v7  ;;  %v742_v34 = vld [vmem:[%s2022_s3 + $0x1d0] sm:$0xff]  ;;  %v745_v47 = vld [vmem:[%s2022_s3 + $0x1e8] sm:$0xff]  ;;  %v696_v48 = vld [vmem:[%s2022_s3 + $0x60] sm:$0xff] }
  0x33   : > { %461 = vmatprep.mubr.f32.mxu1 %v1355_v7  ;;  %v684_v7 = vld [vmem:[%s2022_s3] sm:$0xff]  ;;  %1188 = vmatpush3.bf16.msra.mxu1 %v1187_v46  ;;  %v729_v52 = vld [vmem:[%s2022_s3 + $0x168] sm:$0xff]  ;;  %v746_v56 = vld [vmem:[%s2022_s3 + $0x1f0] sm:$0xff] }
  0x34   : > { %v1155_v43 = vpack.c.bf16 %v685_v41, %v684_v7  ;;  %1190 = vmatprep.subr.bf16.mxu1 %v1189_v54  ;;  %v1175_v7 = vpack.c.bf16 %v695_v39, %v694_v38  ;;  %v727_v41 = vld [vmem:[%s2022_s3 + $0x158] sm:$0xff]  ;;  %v744_v46 = vld [vmem:[%s2022_s3 + $0x1e0] sm:$0xff]  ;;  %v714_v54 = vld [vmem:[%s2022_s3 + $0xf0] sm:$0xff] }
  0x35   : > { %385 = vmatmul.mubr.f32.gmra.mrb[2].mxu0 %v227_v35  ;;  %v1207_v44 = vpack.c.bf16 %v727_v41, %v726_v40  ;;  %v1209_v49 = vpack.c.bf16 %v745_v47, %v744_v46  ;;  %v728_v51 = vld [vmem:[%s2022_s3 + $0x160] sm:$0xff]  ;;  %v747_v59 = vld [vmem:[%s2022_s3 + $0x1f8] sm:$0xff]  ;;  %v698_v60 = vld [vmem:[%s2022_s3 + $0x70] sm:$0xff] }
  0x36   : > { %462 = vmatmul.mubr.f32.gmra.mrb[2].mxu1 %v227_v35  ;;  %1156 = vmatpush3.bf16.msra.mxu0 %v1155_v43  ;;  %v743_v35 = vld [vmem:[%s2022_s3 + $0x1d8] sm:$0xff]  ;;  %v713_v43 = vld [vmem:[%s2022_s3 + $0xe8] sm:$0xff]  ;;  %v1211_v57 = vpack.c.bf16 %v729_v52, %v728_v51  ;;  %v730_v63 = vld [vmem:[%s2022_s3 + $0x170] sm:$0xff] }
  0x37   : > { %1158 = vmatprep.subr.bf16.mxu0 %v1157_v50  ;;  %1192 = vmatpush3.bf16.msra.mxu1 %v1191_v58  ;;  %v1205_v37 = vpack.c.bf16 %v743_v35, %v742_v34  ;;  %v1177_v45 = vpack.c.bf16 %v713_v43, %v712_v42  ;;  %v697_v50 = vld [vmem:[%s2022_s3 + $0x68] sm:$0xff]  ;;  %v699_v61 = vld [vmem:[%s2022_s3 + $0x78] sm:$0xff] }
  0x38   : > { %1194 = vmatprep.subr.bf16.mxu1 %v1193_v2  ;;  %v1179_v53 = vpack.c.bf16 %v697_v50, %v696_v48  ;;  %v731_v0 = vld [vmem:[%s2022_s3 + $0x178] sm:$0xff]  ;;  %v1183_v1 = vpack.c.bf16 %v699_v61, %v698_v60 }
  0x39   : > { %v1215_v2 = vpack.c.bf16 %v731_v0, %v730_v63 }
  0x3a   : > { %1160 = vmatpush3.bf16.msra.mxu0 %v1159_v55  ;;  %v715_v55 = vld [vmem:[%s2022_s3 + $0xf8] sm:$0xff] }
  0x3b   : > { %1162 = vmatprep.subr.bf16.mxu0 %v1161_v62  ;;  %1196 = vmatpush3.bf16.msra.mxu1 %v1195_v6  ;;  %v1181_v58 = vpack.c.bf16 %v715_v55, %v714_v54  ;;  %v1213_v62 = vpack.c.bf16 %v747_v59, %v746_v56  ;;  %v292_v6 = vld [vmem:[%s2021_s2] sm:$0xf] }
  0x3c   : > { %1198 = vmatprep.subr.bf16.mxu1 %v1197_v15 }
  0x3e   : > { %1164 = vmatpush3.bf16.msra.mxu0 %v1163_v3  ;;  %v294_v3 = vlaneseq }
  0x3f   : > { %1166 = vmatprep.subr.bf16.mxu0 %v1165_v11  ;;  %1200 = vmatpush3.bf16.msra.mxu1 %v1199_v19 }
  0x40   : > { %1202 = vmatprep.subr.bf16.mxu1 %v1201_v27  ;;  %v295_v4 = vshrl.u32 %v294_v3, 7 }
  0x42   : > { %1168 = vmatpush3.bf16.msra.mxu0 %v1167_v16  ;;  %v296_v5 = vsub.s32 0, %v295_v4  ;;  %v304_v8 = vsub.s32 2, %v295_v4  ;;  %v300_v9 = vsub.s32 1, %v295_v4  ;;  %v308_v10 = vsub.s32 3, %v295_v4 }
  0x43   : > { %1170 = vmatprep.subr.bf16.mxu0 %v1169_v23  ;;  %1204 = vmatpush3.bf16.msra.mxu1 %v1203_v32 }
  0x44   : > { %1206 = vmatprep.subr.bf16.mxu1 %v1205_v37  ;;  %v297_v11 = vrot.slane %v292_v6, %v296_v5  ;;  %v305_v12 = vrot.slane %v292_v6, %v304_v8  ;;  %v301_v13 = vrot.slane %v292_v6, %v300_v9  ;;  %v309_v14 = vrot.slane %v292_v6, %v308_v10 }
  0x46   : > { %1172 = vmatpush3.bf16.msra.mxu0 %v1171_v28 }
  0x47   : > { %1174 = vmatprep.subr.bf16.mxu0 %v1173_v36  ;;  %1208 = vmatpush3.bf16.msra.mxu1 %v1207_v44 }
  0x48   : > { %1210 = vmatprep.subr.bf16.mxu1 %v1209_v49 }
  0x4a   : > { %1176 = vmatpush3.bf16.msra.mxu0 %v1175_v7 }
  0x4b   : > { %1178 = vmatprep.subr.bf16.mxu0 %v1177_v45  ;;  %1212 = vmatpush3.bf16.msra.mxu1 %v1211_v57 }
  0x4c   : > { %1214 = vmatprep.subr.bf16.mxu1 %v1213_v62 }
  0x4e   : > { %1180 = vmatpush3.bf16.msra.mxu0 %v1179_v53 }
  0x4f   : > { %1182 = vmatprep.subr.bf16.mxu0 %v1181_v58  ;;  %1216 = vmatpush3.bf16.msra.mxu1 %v1215_v2 }
  0x52   : > { %1184 = vmatpush3.bf16.msra.mxu0 %v1183_v1 }
 0x104   : > { %v380_v15 = vpop.f32.mrb[0].mxu0 }
 0x105   : > { %v381_v16 = vadd.f32 %v380_v15, %v297_v11  ;;  %v457_v17 = vpop.f32.mrb[0].mxu1  ;;  %v382_v18 = vpop.f32.mrb[1].mxu0 }
 0x106   : > { %v1842_v19 = vadd.f32 %v457_v17, %v305_v12  ;;  %v383_v20 = vadd.f32 %v382_v18, %v301_v13  ;;  %v459_v21 = vpop.f32.mrb[1].mxu1 }
 0x107   : > { %v1844_v22 = vmul.f32 0.70710677, %v381_v16  ;;  %v1846_v23 = vadd.f32 %v459_v21, %v309_v14  ;;  %v1880_v60 = vmul.f32 0.5, %v381_v16 }
 0x108   : > { %v1849_v24 = vmul.f32 0.70710677, %v1842_v19  ;;  %v1851_v25 = vmul.f32 0.70710677, %v383_v20  ;;  %v386_v36 = vpop.f32.mrb[2].mxu0 }
 0x109   : > { %v476_v26 = vand.u32 2147483647, %v1844_v22  ;;  %v1855_v27 = vmul.f32 0.70710677, %v1846_v23  ;;  %v463_v37 = vpop.f32.mrb[2].mxu1  ;;  %v388_v39 = vpop.f32.mrb[3].mxu0  ;;  %v1860_v41 = vadd.f32 %v386_v36, %v297_v11 }
 0x10a   : > { %v478_v28 = vand.u32 2147483647, %v1849_v24  ;;  %v477_v29 = vand.u32 2147483647, %v1851_v25  ;;  %v465_v40 = vpop.f32.mrb[3].mxu1  ;;  %v1862_v43 = vadd.f32 %v463_v37, %v305_v12  ;;  %v1864_v44 = vadd.f32 %v388_v39, %v301_v13 }
 0x10b   : > { %v484_v30 = vmul.f32 0.3275911, %v476_v26  ;;  %v479_v31 = vand.u32 2147483647, %v1855_v27  ;;  %v1867_v45 = vmul.f32 0.70710677, %v1860_v41  ;;  %v1876_v51 = vadd.f32 %v465_v40, %v309_v14 }
 0x10c   : > { %v486_v32 = vmul.f32 0.3275911, %v478_v28  ;;  %v485_v33 = vmul.f32 0.3275911, %v477_v29  ;;  %v1870_v46 = vmul.f32 0.70710677, %v1862_v43 }
 0x10d   : > { %v492_v34 = vadd.f32 1.0, %v484_v30  ;;  %v487_v35 = vmul.f32 0.3275911, %v479_v31  ;;  %v1873_v47 = vmul.f32 0.70710677, %v1864_v44  ;;  %v588_v48 = vsub.f32 0.0, %v476_v26 }
 0x10e   : > { %v494_v38 = vadd.f32 1.0, %v486_v32  ;;  %v493_v7 = vadd.f32 1.0, %v485_v33  ;;  %v590_v49 = vsub.f32 0.0, %v478_v28  ;;  %v480_v50 = vand.u32 2147483647, %v1867_v45 }
 0x10f   : > { %1259 = vrcp.f32 %v492_v34  ;;  %v495_v42 = vadd.f32 1.0, %v487_v35  ;;  %v589_v52 = vsub.f32 0.0, %v477_v29  ;;  %v482_v53 = vand.u32 2147483647, %v1870_v46 }
 0x110   : > { %1261 = vrcp.f32 %v494_v38  ;;  %v481_v54 = vand.u32 2147483647, %v1873_v47  ;;  %v488_v55 = vmul.f32 0.3275911, %v480_v50  ;;  %v591_v56 = vsub.f32 0.0, %v479_v31 }
 0x111   : > { %1263 = vrcp.f32 %v493_v7  ;;  %v490_v57 = vmul.f32 0.3275911, %v482_v53  ;;  %v596_v59 = vmul.f32 %v588_v48, %v476_v26  ;;  %v1883_v62 = vmul.f32 0.70710677, %v1876_v51 }
 0x112   : > { %1265 = vrcp.f32 %v495_v42  ;;  %v489_v58 = vmul.f32 0.3275911, %v481_v54  ;;  %v496_v61 = vadd.f32 1.0, %v488_v55  ;;  %v598_v0 = vmul.f32 %v590_v49, %v478_v28 }
 0x113   : > { %v597_v1 = vmul.f32 %v589_v52, %v477_v29  ;;  %v592_v2 = vsub.f32 0.0, %v480_v50  ;;  %v498_v3 = vadd.f32 1.0, %v490_v57  ;;  %v483_v8 = vand.u32 2147483647, %v1883_v62 }
 0x114   : > { %1267 = vrcp.f32 %v496_v61  ;;  %v497_v6 = vadd.f32 1.0, %v489_v58  ;;  %v599_v10 = vmul.f32 %v591_v56, %v479_v31  ;;  %v594_v11 = vsub.f32 0.0, %v482_v53 }
 0x115   : > { %1269 = vrcp.f32 %v498_v3  ;;  %v1892_v13 = vmul.f32 0.5, %v383_v20  ;;  %v593_v14 = vsub.f32 0.0, %v481_v54  ;;  %v491_v15 = vmul.f32 0.3275911, %v483_v8 }
 0x116   : > { %v604_v17 = vmul.f32 1.442695, %v596_v59  ;;  %v608_v21 = vmul.f32 1.442695, %v598_v0  ;;  %v600_v26 = vmul.f32 %v592_v2, %v480_v50  ;;  %v606_v29 = vmul.f32 1.442695, %v597_v1 }
 0x117   : > { %1271 = vrcp.f32 %v497_v6  ;;  %v499_v30 = vadd.f32 1.0, %v491_v15  ;;  %v610_v33 = vmul.f32 1.442695, %v599_v10  ;;  %v602_v20 = vmul.f32 %v594_v11, %v482_v53 }
 0x118   : > { %v601_v36 = vmul.f32 %v593_v14, %v481_v54  ;;  %v612_v39 = vmul.f32 1.442695, %v600_v26  ;;  %v595_v42 = vsub.f32 0.0, %v483_v8  ;;  %vm636_vm0 = vcmp.ge.f32.partialorder %v1844_v22, 0.0 }
 0x119   : > { %v1885_v63 = vpop.eup %1259  ;;  %1273 = vrcp.f32 %v499_v30  ;;  %v616_v50 = vmul.f32 1.442695, %v602_v20  ;;  %vm638_vm1 = vcmp.ge.f32.partialorder %v1849_v24, 0.0  ;;  %vm637_vm2 = vcmp.ge.f32.partialorder %v1851_v25, 0.0 }
 0x11a   : > { %v1887_v4 = vpop.eup %1261  ;;  %v516_v5 = vmul.f32 1.0614054, %v1885_v63  ;;  %1275 = vpow2.f32 %v604_v17  ;;  %v614_v55 = vmul.f32 1.442695, %v601_v36  ;;  %v603_v1 = vmul.f32 %v595_v42, %v483_v8 }
 0x11b   : > { %v518_v9 = vmul.f32 1.0614054, %v1887_v4  ;;  %v1894_v16 = vpop.eup %1263  ;;  %1277 = vpow2.f32 %v608_v21  ;;  %vm639_vm3 = vcmp.ge.f32.partialorder %v1855_v27, 0.0  ;;  %vm640_vm4 = vcmp.ge.f32.partialorder %v1867_v45, 0.0 }
 0x11c   : > { %v990_v12 = vadd.f32 -1.4531521, %v516_v5  ;;  %v1897_v32 = vpop.eup %1265  ;;  %v517_v34 = vmul.f32 1.0614054, %v1894_v16  ;;  %1279 = vpow2.f32 %v606_v29  ;;  %vm642_vm5 = vcmp.ge.f32.partialorder %v1870_v46, 0.0 }
 0x11d   : > { %v992_v18 = vadd.f32 -1.4531521, %v518_v9  ;;  %v519_v37 = vmul.f32 1.0614054, %v1897_v32  ;;  %1281 = vpow2.f32 %v610_v33  ;;  %vm641_vm6 = vcmp.ge.f32.partialorder %v1873_v47, 0.0 }
 0x11e   : > { %v532_v28 = vmul.f32 %v1885_v63, %v990_v12  ;;  %v991_v40 = vadd.f32 -1.4531521, %v517_v34  ;;  %v1905_v53 = vpop.eup %1267  ;;  %1283 = vpow2.f32 %v612_v39  ;;  %vm643_vm7 = vcmp.ge.f32.partialorder %v1883_v62, 0.0  ;;  %v1006_v62 = vld [vmem:[%s2023_s4] ss:$0 sm:$0xff] }
 0x11f   : > { %v534_v31 = vmul.f32 %v1887_v4, %v992_v18  ;;  %v993_v48 = vadd.f32 -1.4531521, %v519_v37  ;;  %v1908_v57 = vpop.eup %1269  ;;  %v520_v61 = vmul.f32 1.0614054, %v1905_v53  ;;  %1285 = vpow2.f32 %v616_v50 }
 0x120   : > { %v540_v35 = vadd.f32 1.4214138, %v532_v28  ;;  %v533_v52 = vmul.f32 %v1894_v16, %v991_v40  ;;  %v522_v3 = vmul.f32 1.0614054, %v1908_v57  ;;  %1287 = vpow2.f32 %v614_v55 }
 0x121   : > { %v542_v38 = vadd.f32 1.4214138, %v534_v31  ;;  %v535_v56 = vmul.f32 %v1897_v32, %v993_v48  ;;  %v994_v9 = vadd.f32 -1.4531521, %v520_v61  ;;  %v1915_v10 = vpop.eup %1271  ;;  %v618_v28 = vmul.f32 1.442695, %v603_v1 }
 0x122   : > { %v548_v7 = vmul.f32 %v1885_v63, %v540_v35  ;;  %v541_v59 = vadd.f32 1.4214138, %v533_v52  ;;  %v996_v14 = vadd.f32 -1.4531521, %v522_v3  ;;  %v521_v8 = vmul.f32 1.0614054, %v1915_v10 }
 0x123   : > { %v550_v49 = vmul.f32 %v1887_v4, %v542_v38  ;;  %v543_v2 = vadd.f32 1.4214138, %v535_v56  ;;  %v536_v18 = vmul.f32 %v1905_v53, %v994_v9  ;;  %v1920_v21 = vpop.eup %1273  ;;  %1289 = vpow2.f32 %v618_v28 }
 0x124   : > { %v998_v54 = vadd.f32 -0.28449672, %v548_v7  ;;  %v549_v6 = vmul.f32 %v1894_v16, %v541_v59  ;;  %v538_v30 = vmul.f32 %v1908_v57, %v996_v14  ;;  %v1276_v31 = vpop.eup %1275  ;;  %v995_v34 = vadd.f32 -1.4531521, %v521_v8 }
 0x125   : > { %v1000_v58 = vadd.f32 -0.28449672, %v550_v49  ;;  %v551_v12 = vmul.f32 %v1897_v32, %v543_v2  ;;  %v523_v35 = vmul.f32 1.0614054, %v1920_v21  ;;  %v1278_v36 = vpop.eup %1277  ;;  %v544_v38 = vadd.f32 1.4214138, %v536_v18 }
 0x126   : > { %v564_v0 = vmul.f32 %v1885_v63, %v998_v54  ;;  %v999_v17 = vadd.f32 -0.28449672, %v549_v6  ;;  %v546_v39 = vadd.f32 1.4214138, %v538_v30  ;;  %v1280_v40 = vpop.eup %1279  ;;  %v537_v48 = vmul.f32 %v1915_v10, %v995_v34 }
 0x127   : > { %v566_v5 = vmul.f32 %v1887_v4, %v1000_v58  ;;  %v1001_v29 = vadd.f32 -0.28449672, %v551_v12  ;;  %v997_v49 = vadd.f32 -1.4531521, %v523_v35  ;;  %v552_v54 = vmul.f32 %v1905_v53, %v544_v38 }
 0x128   : > { %v572_v11 = vadd.f32 0.2548296, %v564_v0  ;;  %v565_v20 = vmul.f32 %v1894_v16, %v999_v17  ;;  %v554_v55 = vmul.f32 %v1908_v57, %v546_v39  ;;  %v545_v61 = vadd.f32 1.4214138, %v537_v48 }
 0x129   : > { %v574_v15 = vadd.f32 0.2548296, %v566_v5  ;;  %v539_v0 = vmul.f32 %v1920_v21, %v997_v49  ;;  %v1002_v3 = vadd.f32 -0.28449672, %v552_v54  ;;  %v663_v48 = vmul.f32 0.5, %v1846_v23 }
 0x12a   : > { %v580_v26 = vmul.f32 %v1885_v63, %v572_v11  ;;  %v567_v63 = vmul.f32 %v1897_v32, %v1001_v29  ;;  %v573_v42 = vadd.f32 0.2548296, %v565_v20  ;;  %v1004_v5 = vadd.f32 -0.28449672, %v554_v55 }
 0x12b   : > { %v582_v33 = vmul.f32 %v1887_v4, %v574_v15  ;;  %v1282_v4 = vpop.eup %1281  ;;  %v553_v12 = vmul.f32 %v1915_v10, %v545_v61  ;;  %v547_v14 = vadd.f32 1.4214138, %v539_v0  ;;  %v667_v46 = vmul.f32 0.5, %v1876_v51 }
 0x12c   : > { %v620_v37 = vmul.f32 %v1276_v31, %v580_v26  ;;  %v575_v52 = vadd.f32 0.2548296, %v567_v63  ;;  %v1284_v56 = vpop.eup %1283  ;;  %v581_v59 = vmul.f32 %v1894_v16, %v573_v42  ;;  %v568_v16 = vmul.f32 %v1905_v53, %v1002_v3 }
 0x12d   : > { %v622_v7 = vmul.f32 %v1278_v36, %v582_v33  ;;  %v1286_v6 = vpop.eup %1285  ;;  %v570_v8 = vmul.f32 %v1908_v57, %v1004_v5  ;;  %v1003_v26 = vadd.f32 -0.28449672, %v553_v12  ;;  %v555_v31 = vmul.f32 %v1920_v21, %v547_v14 }
 0x12e   : > { %v628_v50 = vsub.f32 1.0, %v620_v37  ;;  %v583_v2 = vmul.f32 %v1897_v32, %v575_v52  ;;  %v621_v11 = vmul.f32 %v1280_v40, %v581_v59  ;;  %v1288_v15 = vpop.eup %1287  ;;  %v576_v33 = vadd.f32 0.2548296, %v568_v16 }
 0x12f   : > { %v630_v58 = vsub.f32 1.0, %v622_v7  ;;  %v569_v34 = vmul.f32 %v1915_v10, %v1003_v26  ;;  %v578_v35 = vadd.f32 0.2548296, %v570_v8  ;;  %v1005_v22 = vadd.f32 -0.28449672, %v555_v31  ;;  %v1290_v0 = vpop.eup %1289 }
 0x130   : > { %v644_v1 = vsub.f32 0.0, %v628_v50  ;;  %v623_v17 = vmul.f32 %v1282_v4, %v583_v2  ;;  %v629_v32 = vsub.f32 1.0, %v621_v11  ;;  %v584_v28 = vmul.f32 %v1905_v53, %v576_v33 }
 0x131   : > { %v646_v9 = vsub.f32 0.0, %v630_v58  ;;  %v577_v38 = vadd.f32 0.2548296, %v569_v34  ;;  %v586_v39 = vmul.f32 %v1908_v57, %v578_v35  ;;  %v571_v27 = vmul.f32 %v1920_v21, %v1005_v22 }
 0x132   : > { %v652_v18 = vsel %vm636_vm0, %v628_v50, %v644_v1  ;;  %v631_v30 = vsub.f32 1.0, %v623_v17  ;;  %v645_v20 = vsub.f32 0.0, %v629_v32  ;;  %v624_v42 = vmul.f32 %v1284_v56, %v584_v28 }
 0x133   : > { %v654_v29 = vsel %vm638_vm1, %v630_v58, %v646_v9  ;;  %v668_v36 = vadd.f32 1.0, %v652_v18  ;;  %v585_v4 = vmul.f32 %v1915_v10, %v577_v38  ;;  %v626_v50 = vmul.f32 %v1286_v6, %v586_v39 }
 0x134   : > { %v647_v37 = vsub.f32 0.0, %v631_v30  ;;  %v670_v63 = vadd.f32 1.0, %v654_v29  ;;  %v653_v24 = vsel %vm637_vm2, %v629_v32, %v645_v20  ;;  %v662_v53 = vmul.f32 0.5, %v1842_v19 }
 0x135   : > { %v669_v40 = vadd.f32 1.0, %v653_v24  ;;  %v579_v25 = vadd.f32 0.2548296, %v571_v27  ;;  %v632_v54 = vsub.f32 1.0, %v624_v42  ;;  %v676_v55 = vmul.f32 %v668_v36, %v1880_v60 }
 0x136   : > { %v655_v7 = vsel %vm639_vm3, %v631_v30, %v647_v37  ;;  %v625_v58 = vmul.f32 %v1288_v15, %v585_v4  ;;  %v634_v59 = vsub.f32 1.0, %v626_v50  ;;  %v678_v61 = vmul.f32 %v670_v63, %v662_v53 }
 0x137   : > { %v671_v49 = vadd.f32 1.0, %v655_v7  ;;  %v677_v52 = vmul.f32 %v669_v40, %v1892_v13  ;;  %v587_v56 = vmul.f32 %v1920_v21, %v579_v25  ;;  %v648_v23 = vsub.f32 0.0, %v632_v54 }
 0x138   : > { %v633_v19 = vsub.f32 1.0, %v625_v58  ;;  %v650_v10 = vsub.f32 0.0, %v634_v59  ;;  %v665_v6 = vmul.f32 0.5, %v1864_v44  ;;  %v664_v11 = vmul.f32 0.5, %v1860_v41 }
 0x139   : > { %v679_v57 = vmul.f32 %v671_v49, %v663_v48  ;;  %819 = vmatprep.mubr.f32.mxu0 %v677_v52  ;;  %v627_v13 = vmul.f32 %v1290_v0, %v587_v56  ;;  %v656_v1 = vsel %vm640_vm4, %v632_v54, %v648_v23  ;;  %v666_v16 = vmul.f32 0.5, %v1862_v43 }
 0x13a   : > { %820 = vmatmul.mubr.f32.vlgmr.msra.gmra.mrb[4].mxu0 %v676_v55  ;;  %v649_v2 = vsub.f32 0.0, %v633_v19  ;;  %v672_v5 = vadd.f32 1.0, %v656_v1  ;;  %v658_v21 = vsel %vm642_vm5, %v634_v59, %v650_v10 }
 0x13b   : > { %894 = vmatprep.mubr.f32.mxu1 %v679_v57  ;;  %v635_v60 = vsub.f32 1.0, %v627_v13  ;;  %v674_v15 = vadd.f32 1.0, %v658_v21 }
 0x13c   : > { %895 = vmatmul.mubr.f32.vlgmr.msra.gmra.mrb[4].mxu1 %v678_v61  ;;  %v657_v3 = vsel %vm641_vm6, %v633_v19, %v649_v2  ;;  %v680_v47 = vmul.f32 %v672_v5, %v664_v11 }
 0x13d   : > { %v673_v9 = vadd.f32 1.0, %v657_v3  ;;  %v651_v45 = vsub.f32 0.0, %v635_v60  ;;  %v682_v44 = vmul.f32 %v674_v15, %v666_v16 }
 0x13f   : > { %v681_v12 = vmul.f32 %v673_v9, %v665_v6  ;;  %v659_v14 = vsel %vm643_vm7, %v635_v60, %v651_v45 }
 0x140   : > { %v675_v17 = vadd.f32 1.0, %v659_v14 }
 0x141   : > { %824 = vmatprep.mubr.f32.mxu0 %v681_v12 }
 0x142   : > { %v683_v8 = vmul.f32 %v675_v17, %v667_v46  ;;  %825 = vmatmul.mubr.f32.gmra.mrb[6].mxu0 %v680_v47 }
 0x144   : > { %899 = vmatprep.mubr.f32.mxu1 %v683_v8 }
 0x145   : > { %900 = vmatmul.mubr.f32.gmra.mrb[6].mxu1 %v682_v44 }
 0x20d   : > { %v1045_v18 = vpop.f32.mrb[4].mxu0 }
 0x20e   : > { %v1046_v32 = vpop.f32.mrb[5].mxu0 }
 0x20f   : > { %v1083_v41 = vpop.f32.mrb[4].mxu1  ;;  %v1047_v51 = vadd.f32 %v1046_v32, %v1045_v18 }
 0x210   : > { %v1084_v26 = vpop.f32.mrb[5].mxu1 }
 0x211   : > { %v1085_v29 = vadd.f32 %v1084_v26, %v1083_v41  ;;  %v822_v43 = vadd.f32 %v1047_v51, %v1006_v62 }
 0x213   : > { %v897_v30 = vadd.f32 %v1085_v29, %v822_v43 }
 0x215   : > { %905 = vst [vmem:[%s218_s10] sm:$0xff] %v897_v30  ;;  %v1048_v31 = vpop.f32.mrb[6].mxu0 }
 0x216   : > { %v1049_v33 = vpop.f32.mrb[7].mxu0 }
 0x217   : > { %v1050_v20 = vadd.f32 %v1049_v33, %v1048_v31 }
 0x218   : > { %v1086_v34 = vpop.f32.mrb[6].mxu1 }
 0x219   : > { %v827_v35 = vadd.f32 %v1050_v20, %v1006_v62  ;;  %v1087_v36 = vpop.f32.mrb[7].mxu1 }
 0x21a   : > { %v1088_v37 = vadd.f32 %v1087_v36, %v1086_v34 }
 0x21c   : > { %v902_v22 = vadd.f32 %v1088_v37, %v827_v35 }
 0x21e   : > { %906 = vst [vmem:[%s218_s10 + $0x8] sm:$0xff] %v902_v22 }
 0x21f   : > { %1304 = shalt.err (!%p1301_p3)
}
 0x220   : > { %s1305_s13 = scalar_lea.hbm %s1976_s8, 256  ;;  %s1309_s17 = scalar_lea.hbm %s2024_s5, 512 }
 0x221   : > { %p1306_p4 = scmp.ne.s32.totalorder %s1976_s8, %s1305_s13  ;;  %p1310_p9 = scmp.lt.u32.totalorder %s1976_s8, %s2024_s5 }
 0x222   : > { %p1311_p10 = scmp.lt.u32.totalorder %s1309_s17, %s1305_s13  ;;  %p1313_p12 = scmp.lt.u32.totalorder %s1305_s13, %s1976_s8 }
 0x223   : > { %p1307_p7 = pnand %p1306_p4, %p1427_p5 }
 0x224   : > { %p1312_p11 = por %p1311_p10, %p1310_p9 }
 0x225   : > { %p1308_p8 = pneg %p1307_p7 }
 0x226   : > { %p1314_p13 = por %p1313_p12, %p1312_p11 }
 0x228   : > { %p1315_p0 = pnand %p1314_p13, %p1308_p8 }
 0x22a   : > { %1318 = shalt.err (!%p1315_p0)
}
 0x22b   : > { %s1357_s10 = smov 128   ;;  %s1358_s30 = smov 8  }
 0x22c   : > { %1217 = dma.vmem_to_hbm [thread:$0]  (%p1427_p5), %s1971_s26, 256, %s1976_s8, %s1978_s9, %s1357_s10, %s1357_s10, %s1358_s30  }
 0x22d PF: > { %p1223_p1 = scmp.ge.s32.totalorder %s1353_s21, 2  ;;  %s936_s6 = sand.u32 1, %s1341_s18  }
 0x22e   : > { %s937_s7 = scalar_lea.sflag [#allocation3], %s936_s6 }
 0x22f   : > { %p1220_p2 = pnand %p1223_p1, %p1431_p6 }
 0x231   : > { %1336 = dma.done.wait (!%p1220_p2), %s937_s7, 256  }
 0x232   : > { %1338 = vsyncadd (!%p1220_p2), %s937_s7, 4294967040  ;;  %p15_p3 = scmp.ge.s32.totalorder %s1414_s24, 4   ;;  %s2028_s18 = smov %s1345_s19 }
 0x233   : > { %s2029_s19 = smov %s1349_s20  ;;  %s2030_s20 = smov %s1425_s27 }
 0x234   : > { %s2031_s21 = smov %s1414_s24  ;;  %17 = sbr.rel (!%p15_p3) target bundleno = 3 (0x3), region = 75 }
 0x23b   :  { %942 = vsyncpa [#allocation3], 1 }
 0x23c   :  { %944 = vsyncpa [#allocation3 + $0x1], 1 }

</bundles_post_ra>
